<compile_context>
chip_gen: v7x
topology: tpu7x:2x2x1
jax: 0.10.0
libtpu: 0.0.40
codegen_flags: <defaults>
</compile_context>

<pallas_src>
import jax
import jax.numpy as jnp
import numpy as np
from jax.experimental import pallas as pl
from jax.experimental.pallas import tpu as pltpu


# ----------------------------- small helpers ------------------------------

def _round_up(n, m):
    return ((n + m - 1) // m) * m


def pool_matrix(L, pool):
    """(L, L//pool) average-pool matrix (truncates the tail like torch AvgPool)."""
    Lp = L // pool
    t = np.arange(L)[:, None]
    l = np.arange(Lp)[None, :]
    return jnp.asarray(((t // pool) == l).astype(np.float32) / float(pool))


def bn_fold(g, b, rm, rv, eps=1e-5):
    scale = g / jnp.sqrt(rv + eps)
    shift = b - rm * scale
    return scale, shift


def _blockdiag(m, bt):
    """kron(I_bt, m): block-diagonal weight so a batch tile stacked on sublanes is one matmul."""
    if bt == 1:
        return m
    return jnp.kron(jnp.eye(bt, dtype=m.dtype), m)


def _pack_slab(entries, width):
    """Pack small 2-D operands into one (R, width) slab; every block starts 8-sublane aligned."""
    parts, offs, r = [], {}, 0
    for name, a in entries:
        a = jnp.asarray(a, jnp.float32)
        rows, cols = int(a.shape[0]), int(a.shape[1])
        assert cols <= width, (name, cols, width)
        rows_p = _round_up(rows, 8)
        offs[name] = r
        parts.append(jnp.pad(a, ((0, rows_p - rows), (0, width - cols))))
        r += rows_p
    return jnp.concatenate(parts, axis=0), offs


# ----------------------------- operand packing ------------------------------

def tsception_build(p, C, T, bt):
    """Fold BN layers / channel-pair diff / pooling into weights and pack them into two slabs.

    Returns (wide, slab, meta):
      wide : (T+1, nT*blk) f32 — Toeplitz conv bank, per-filter block lane-padded to `blk`
             (a multiple of 128); the last row is the conv bias (folded via a ones column of x).
      slab : (R, width) f32    — all remaining small operands, 8-sublane-aligned blocks.
      meta : dict of static python ints / offsets used by the kernel.
    """
    assert C % 2 == 0, "channel-pair difference needs an even channel count"
    nT = p["t1_w"].shape[0]
    nS = p["s1_b"].shape[0]
    hidden = p["fc1_w"].shape[0]
    ncls = p["fc2_w"].shape[0]
    pool = 8

    # ---- Tception: one Toeplitz bank for 3 branches x nT filters, bias as the last row ----
    tws = [p["t1_w"], p["t2_w"], p["t3_w"]]
    tbs = [p["t1_b"], p["t2_b"], p["t3_b"]]
    Louts = [T - int(w.shape[1]) + 1 for w in tws]
    Lps = [L // pool for L in Louts]
    sigma = sum(Louts)
    Lt = sum(Lps)
    blk = _round_up(sigma, 128)            # per-filter lane block -> 128-aligned static slices
    ncols = nT * blk

    fblocks = []
    for f in range(nT):
        fcols = []
        for w, b, L in zip(tws, tbs, Louts):
            k = int(w.shape[1])
            t = np.arange(T)[:, None]
            l = np.arange(L)[None, :]
            d = t - l
            valid = jnp.asarray((d >= 0) & (d < k))
            dcl = np.clip(d, 0, k - 1)
            col = jnp.where(valid, w[f][dcl], 0.0)                       # (T, L)
            col = jnp.concatenate([col, jnp.full((1, L), b[f], jnp.float32)], axis=0)
            fcols.append(col)                                            # (T+1, L)
        fblock = jnp.concatenate(fcols, axis=1)                          # (T+1, sigma)
        fblocks.append(jnp.pad(fblock, ((0, 0), (0, blk - sigma))))
    wide = jnp.concatenate(fblocks, axis=1)                              # (T+1, nT*blk)

    # shared per-filter AvgPool(1,8) matrix (same column layout in every padded filter block)
    pool_sh = np.zeros((blk, Lt), np.float32)
    coff = poff = 0
    for L, Lp in zip(Louts, Lps):
        for l in range(Lp * pool):
            pool_sh[coff + l, poff + l // pool] = 1.0 / pool
        coff += L
        poff += Lp
    pool_sh = jnp.asarray(pool_sh)

    # ---- BN_t folded into Sception1 and Sception2(+channel-pair diff) weights ----
    sc_t, sh_t = bn_fold(p["bnt_g"], p["bnt_b"], p["bnt_rm"], p["bnt_rv"])
    ws1 = p["s1_w"][:, :, :, 0]                                          # (nS, nT, C)
    ws2 = p["s2_w"][:, :, :, 0]                                          # (nS, nT, C//2)
    ws1f = ws1 * sc_t[None, :, None]
    bs1f = p["s1_b"] + jnp.einsum("sfc,f->s", ws1, sh_t)
    ws2f = jnp.stack([ws2 * sc_t[None, :, None],                         # +even row
                      -ws2 * sc_t[None, :, None]], axis=-1)              # -odd row (shift cancels)
    ws2f = ws2f.reshape(nS, nT, C)
    wsc = jnp.concatenate([ws1f, ws2f], axis=0)                          # (2nS, nT, C)
    bsc = jnp.concatenate([bs1f, p["s2_b"]], axis=0)                     # (2nS,)

    pool2 = pool_matrix(Lt, pool // 4)                                   # Sception AvgPool(1,2)
    Ls = int(pool2.shape[1])

    # ---- BN_s folded into the fusion conv ----
    sc_s, sh_s = bn_fold(p["bns_g"], p["bns_b"], p["bns_rm"], p["bns_rv"])
    wf0 = p["f_w"][:, :, 0, 0]
    wf1 = p["f_w"][:, :, 1, 0]
    wfuse = jnp.concatenate([wf0 * sc_s[None, :], wf1 * sc_s[None, :]], axis=1)   # (nS, 2nS)
    bfuse = p["f_b"] + (wf0 + wf1) @ sh_s

    # ---- AvgPool(1,4) + temporal mean as one row vector ----
    Lf = Ls // 4
    vmean = np.zeros((1, Ls), np.float32)
    vmean[0, :Lf * 4] = 1.0 / (Lf * 4)
    vmean = jnp.asarray(vmean)

    # ---- BN_fusion folded into FC1 ----
    sc_f, sh_f = bn_fold(p["bnf_g"], p["bnf_b"], p["bnf_rm"], p["bnf_rv"])
    w1 = p["fc1_w"] * sc_f[None, :]
    b1 = p["fc1_b"] + p["fc1_w"] @ sh_f

    # ---- pack everything small into one (R, 128) slab (block-diag over the batch tile) ----
    entries = [("pool_sh", pool_sh)]
    for f in range(nT):
        entries.append((f"wsc{f}", _blockdiag(wsc[:, f, :], bt)))        # (bt*2nS, bt*C)
    entries += [
        ("bsc",   jnp.tile(bsc, bt)[:, None]),                           # (bt*2nS, 1)
        ("pool2", pool2),                                                # (Lt, Ls)
        ("wfuse", _blockdiag(wfuse, bt)),                                # (bt*nS, bt*2nS)
        ("bfuse", jnp.tile(bfuse, bt)[:, None]),                         # (bt*nS, 1)
        ("vmean", vmean),                                                # (1, Ls)
        ("w1T",   _blockdiag(w1.T, bt)),                                 # (bt*nS, bt*hidden)
        ("b1",    jnp.tile(b1, bt)[None, :]),                            # (1, bt*hidden)
        ("w2T",   _blockdiag(p["fc2_w"].T, bt)),                         # (bt*hidden, bt*ncls)
        ("b2",    jnp.tile(p["fc2_b"], bt)[None, :]),                    # (1, bt*ncls)
    ]
    width = _round_up(max(int(a.shape[1]) for _, a in entries), 128)
    slab, offs = _pack_slab(entries, width)

    meta = dict(bt=bt, C=C, T=T, nT=nT, nS=nS, hidden=hidden, ncls=ncls,
                blk=blk, ncols=ncols, Lt=Lt, Ls=Ls, offs=offs)
    return wide, slab, meta


# ----------------------------- fused forward ------------------------------

def tsception_apply(x, wide, slab, meta):
    """x: (B, C, T) — the torch forward input before unsqueeze(1)."""
    B, C, T = x.shape
    bt, nT, nS = meta["bt"], meta["nT"], meta["nS"]
    hidden, ncls = meta["hidden"], meta["ncls"]
    blk, Lt, Ls = meta["blk"], meta["Lt"], meta["Ls"]
    offs = meta["offs"]
    assert C == meta["C"] and T == meta["T"] and B % bt == 0
    n_tiles = B // bt
    ncols = int(wide.shape[1])
    R, width = int(slab.shape[0]), int(slab.shape[1])
    nr2, nr1 = bt * 2 * nS, bt * nS

    # Fold the Tception conv bias into the Toeplitz matmul: append a ones column to x.
    x_aug = jnp.concatenate([x.astype(jnp.float32), jnp.ones((B, C, 1), jnp.float32)], axis=-1)
    x_aug = x_aug.reshape(n_tiles, bt * C, T + 1)

    NT_DIMS = (((1,), (1,)), ((), ()))     # rhs-transposed dot (flash-attention style)

    def kernel(x_ref, wide_ref, slab_ref, o_ref):
        f32 = jnp.float32

        def leaky(v):
            return jnp.where(v > 0.0, v, 0.01 * v)

        # Tception: 3 branches x nT filters as ONE lane-dense Toeplitz matmul (bias in ones col).
        conv = leaky(jnp.dot(x_ref[...], wide_ref[...],
                             preferred_element_type=f32))                 # (bt*C, ncols)

        # Per-filter 128-aligned slice -> shared AvgPool(1,8) -> BN_t-folded Sception1/2 weights.
        pool_sh = slab_ref[offs["pool_sh"]:offs["pool_sh"] + blk, 0:Lt]   # (blk, Lt)
        acc = jnp.zeros((nr2, Lt), f32)
        for f in range(nT):                                               # static unroll, all MXU
            a_f = jnp.dot(conv[:, f * blk:(f + 1) * blk], pool_sh,
                          preferred_element_type=f32)                     # (bt*C, Lt)
            w_f = slab_ref[offs[f"wsc{f}"]:offs[f"wsc{f}"] + nr2, 0:bt * C]
            acc = acc + jnp.dot(w_f, a_f, preferred_element_type=f32)     # (bt*2nS, Lt)
        zc = leaky(acc + slab_ref[offs["bsc"]:offs["bsc"] + nr2, 0:1])
        zp = jnp.dot(zc, slab_ref[offs["pool2"]:offs["pool2"] + Lt, 0:Ls],
                     preferred_element_type=f32)                          # AvgPool(1,2): (nr2, Ls)

        # Fusion conv (BN_s folded) + LeakyReLU.
        zf = leaky(jnp.dot(slab_ref[offs["wfuse"]:offs["wfuse"] + nr1, 0:nr2], zp,
                           preferred_element_type=f32)
                   + slab_ref[offs["bfuse"]:offs["bfuse"] + nr1, 0:1])    # (bt*nS, Ls)

        # AvgPool(1,4) + temporal mean, flipped to a lane-major row: feat = vmean @ zf^T.
        vmean = slab_ref[offs["vmean"]:offs["vmean"] + 1, 0:Ls]
        feat = jax.lax.dot_general(vmean, zf, NT_DIMS,
                                   preferred_element_type=f32)            # (1, bt*nS)

        # FC head (BN_fusion folded into FC1); dropout = identity in eval mode.
        h = jnp.maximum(
            jnp.dot(feat, slab_ref[offs["w1T"]:offs["w1T"] + nr1, 0:bt * hidden],
                    preferred_element_type=f32)
            + slab_ref[offs["b1"]:offs["b1"] + 1, 0:bt * hidden], 0.0)    # (1, bt*hidden)
        o_ref[...] = (jnp.dot(h, slab_ref[offs["w2T"]:offs["w2T"] + bt * hidden, 0:bt * ncls],
                              preferred_element_type=f32)
                      + slab_ref[offs["b2"]:offs["b2"] + 1, 0:bt * ncls])  # lane-dense (1, bt*ncls)

    out = pl.pallas_call(
        kernel,
        out_shape=jax.ShapeDtypeStruct((n_tiles, 1, bt * ncls), jnp.float32),
        grid=(n_tiles,),
        in_specs=[
            pl.BlockSpec((None, bt * C, T + 1), lambda bi: (bi, 0, 0)),
            pl.BlockSpec((T + 1, ncols), lambda bi: (0, 0)),
            pl.BlockSpec((R, width), lambda bi: (0, 0)),
        ],
        out_specs=pl.BlockSpec((None, 1, bt * ncls), lambda bi: (bi, 0, 0)),
        compiler_params=pltpu.CompilerParams(dimension_semantics=("parallel",)),
    )(x_aug, wide, slab)

    return out.reshape(B, ncls)


def tsception_forward(x, p, *, batch_tile=None):
    """Convenience wrapper: pack operands (traced) + run the fused kernel."""
    B, C, T = x.shape
    bt = B if batch_tile is None else batch_tile
    wide, slab, meta = tsception_build(p, C, T, bt)
    return tsception_apply(x, wide, slab, meta)


# ----------------------------- params & reference ---------------------------

def init_params(key, num_classes, C, fs, num_T, num_S, hidden):
    ks = [int(0.5 * fs), int(0.25 * fs), int(0.125 * fs)]
    keys = iter(jax.random.split(key, 32))

    def nrm(shape, s=0.2):
        return s * jax.random.normal(next(keys), shape, jnp.float32)

    p = {}
    for i, k in enumerate(ks, start=1):
        p[f"t{i}_w"] = nrm((num_T, k))
        p[f"t{i}_b"] = nrm((num_T,), 0.1)
    p["s1_w"] = nrm((num_S, num_T, C, 1))
    p["s1_b"] = nrm((num_S,), 0.1)
    p["s2_w"] = nrm((num_S, num_T, C // 2, 1))
    p["s2_b"] = nrm((num_S,), 0.1)
    p["f_w"] = nrm((num_S, num_S, 2, 1))
    p["f_b"] = nrm((num_S,), 0.1)
    for name, n in (("bnt", num_T), ("bns", num_S), ("bnf", num_S)):
        p[name + "_g"] = 1.0 + nrm((n,), 0.1)
        p[name + "_b"] = nrm((n,), 0.1)
        p[name + "_rm"] = nrm((n,), 0.1)
        p[name + "_rv"] = 1.0 + 0.5 * jax.random.uniform(next(keys), (n,), jnp.float32)
    p["fc1_w"] = nrm((hidden, num_S))
    p["fc1_b"] = nrm((hidden,), 0.1)
    p["fc2_w"] = nrm((num_classes, hidden))
    p["fc2_b"] = nrm((num_classes,), 0.1)
    return p


def reference_forward(x, p, C, pool=8):
    """Plain-JAX (lax.conv) replica of the torch forward in eval mode."""
    def leaky(v):
        return jnp.where(v > 0.0, v, 0.01 * v)

    def avgpool_t(y, pw):
        Lp = y.shape[-1] // pw
        y = y[..., :Lp * pw]
        return y.reshape(y.shape[:-1] + (Lp, pw)).mean(axis=-1)

    def conv(xx, w, b, stride):
        y = jax.lax.conv_general_dilated(
            xx, w, window_strides=stride, padding="VALID",
            dimension_numbers=("NCHW", "OIHW", "NCHW"))
        return y + b[None, :, None, None]

    def bn(xx, g, b, rm, rv, eps=1e-5):
        inv = g / jnp.sqrt(rv + eps)
        return xx * inv[None, :, None, None] + (b - rm * inv)[None, :, None, None]

    xi = x[:, None, :, :]
    outs = []
    for i in (1, 2, 3):
        w4 = p[f"t{i}_w"][:, None, None, :]
        outs.append(avgpool_t(leaky(conv(xi, w4, p[f"t{i}_b"], (1, 1))), pool))
    out = jnp.concatenate(outs, axis=-1)
    out = bn(out, p["bnt_g"], p["bnt_b"], p["bnt_rm"], p["bnt_rv"])
    z1 = avgpool_t(leaky(conv(out, p["s1_w"], p["s1_b"], (1, 1))), pool // 4)
    diff = out[:, :, 0:C:2, :] - out[:, :, 1:C:2, :]
    z2 = avgpool_t(leaky(conv(diff, p["s2_w"], p["s2_b"], (C // 2, 1))), pool // 4)
    out_ = jnp.concatenate([z1, z2], axis=2)
    out_ = bn(out_, p["bns_g"], p["bns_b"], p["bns_rm"], p["bns_rv"])
    f = avgpool_t(leaky(conv(out_, p["f_w"], p["f_b"], (1, 1))), 4)
    f = bn(f, p["bnf_g"], p["bnf_b"], p["bnf_rm"], p["bnf_rv"])
    feat = jnp.mean(f, axis=-1)[:, :, 0]
    h = jnp.maximum(feat @ p["fc1_w"].T + p["fc1_b"], 0.0)
    return h @ p["fc2_w"].T + p["fc2_b"]


# ----------------------------- main ------------------------------

if __name__ == "__main__":
    # TSception(num_classes=3, input_size=(1, 4, 64), sampling_rate=16,
    #           num_T=4, num_S=6, hidden=32, dropout_rate=0.5)
    num_classes, C, T, fs = 3, 4, 64, 16
    num_T, num_S, hidden = 4, 6, 32
    B = 2

    key = jax.random.PRNGKey(0)
    kx, kp = jax.random.split(key)
    x = jax.random.normal(kx, (B, C, T), jnp.float32)
    params = init_params(kp, num_classes, C, fs, num_T, num_S, hidden)

    # Pack all weights ONCE (BN folds, Toeplitz bank, pool matrices, block-diag batch tile),
    # then jit only the fused-kernel apply: bt = B -> single grid step, 3 input DMAs total.
    wide, slab, meta = tsception_build(params, C, T, bt=B)
    apply_fn = jax.jit(lambda xx, w, s: tsception_apply(xx, w, s, meta))

    logits = jax.block_until_ready(apply_fn(x, wide, slab))
    ref = jax.block_until_ready(reference_forward(x, params, C))

    assert logits.shape == (B, num_classes)
    np.testing.assert_allclose(np.asarray(logits), np.asarray(ref),
                               rtol=1e-2, atol=1e-2)
    print("KERNEL_OK")
</pallas_src>

<mosaic_0001>
module attributes {stable_mosaic.version = 11 : i64} {
  func.func @kernel(%arg0: i32, %arg1: memref<1x8x65xf32, #tpu.memory_space<vmem>>, %arg2: memref<65x1024xf32, #tpu.memory_space<vmem>>, %arg3: memref<536x128xf32, #tpu.memory_space<vmem>>, %arg4: memref<1x1x6xf32, #tpu.memory_space<vmem>>) attributes {dimension_semantics = [#tpu.dimension_semantics<parallel>], iteration_bounds = array<i64: 1>, scalar_prefetch = 0 : i64, scratch_operands = 0 : i64, tpu.core_type = #tpu.core_type<tc>, window_params = [{transform_indices = @transform_0, window_bounds = array<i64: 1, 8, 65>}, {pipeline_mode = #tpu.pipeline_mode<synchronous>, transform_indices = @transform_1, window_bounds = array<i64: 65, 1024>}, {pipeline_mode = #tpu.pipeline_mode<synchronous>, transform_indices = @transform_2, window_bounds = array<i64: 536, 128>}, {transform_indices = @transform_3, window_bounds = array<i64: 1, 1, 6>}]} {
    %c0 = arith.constant 0 : index
    %c0_0 = arith.constant 0 : index
    %c0_1 = arith.constant 0 : index
    %0 = vector.load %arg1[%c0, %c0_0, %c0_1] : memref<1x8x65xf32, #tpu.memory_space<vmem>>, vector<1x8x65xf32>
    %1 = vector.shape_cast %0 : vector<1x8x65xf32> to vector<8x65xf32>
    %c0_2 = arith.constant 0 : index
    %c0_3 = arith.constant 0 : index
    %2 = vector.load %arg2[%c0_2, %c0_3] : memref<65x1024xf32, #tpu.memory_space<vmem>>, vector<65x1024xf32>
    %cst = arith.constant dense<0.000000e+00> : vector<8x1024xf32>
    %3 = tpu.matmul %1, %2, %cst {dimension_numbers = #tpu.dot_dimension_numbers<[1], [0], [0], [1], [0, 0, 1, 1], [], []>} : vector<8x65xf32>, vector<65x1024xf32>, vector<8x1024xf32> -> vector<8x1024xf32>
    %cst_4 = arith.constant 0.000000e+00 : f32
    %4 = vector.broadcast %cst_4 : f32 to vector<8x1024xf32>
    %5 = arith.cmpf ogt, %3, %4 : vector<8x1024xf32>
    %cst_5 = arith.constant 0.00999999977 : f32
    %6 = vector.broadcast %cst_5 : f32 to vector<8x1024xf32>
    %7 = arith.mulf %6, %3 : vector<8x1024xf32>
    %8 = arith.select %5, %3, %7 : vector<8x1024xi1>, vector<8x1024xf32>
    %c0_6 = arith.constant 0 : index
    %c0_7 = arith.constant 0 : index
    %9 = vector.load %arg3[%c0_6, %c0_7] : memref<536x128xf32, #tpu.memory_space<vmem>>, vector<256x21xf32>
    %cst_8 = arith.constant 0.000000e+00 : f32
    %10 = vector.broadcast %cst_8 : f32 to vector<24x21xf32>
    %11 = vector.extract_strided_slice %8 {offsets = [0, 0], sizes = [8, 256], strides = [1, 1]} : vector<8x1024xf32> to vector<8x256xf32>
    %cst_9 = arith.constant dense<0.000000e+00> : vector<8x21xf32>
    %12 = tpu.matmul %11, %9, %cst_9 {dimension_numbers = #tpu.dot_dimension_numbers<[1], [0], [0], [1], [0, 0, 1, 1], [], []>} : vector<8x256xf32>, vector<256x21xf32>, vector<8x21xf32> -> vector<8x21xf32>
    %c256 = arith.constant 256 : index
    %c0_10 = arith.constant 0 : index
    %13 = vector.load %arg3[%c256, %c0_10] : memref<536x128xf32, #tpu.memory_space<vmem>>, vector<24x8xf32>
    %cst_11 = arith.constant dense<0.000000e+00> : vector<24x21xf32>
    %14 = tpu.matmul %13, %12, %cst_11 {dimension_numbers = #tpu.dot_dimension_numbers<[1], [0], [0], [1], [0, 0, 1, 1], [], []>} : vector<24x8xf32>, vector<8x21xf32>, vector<24x21xf32> -> vector<24x21xf32>
    %15 = arith.addf %10, %14 : vector<24x21xf32>
    %16 = vector.extract_strided_slice %8 {offsets = [0, 256], sizes = [8, 256], strides = [1, 1]} : vector<8x1024xf32> to vector<8x256xf32>
    %cst_12 = arith.constant dense<0.000000e+00> : vector<8x21xf32>
    %17 = tpu.matmul %16, %9, %cst_12 {dimension_numbers = #tpu.dot_dimension_numbers<[1], [0], [0], [1], [0, 0, 1, 1], [], []>} : vector<8x256xf32>, vector<256x21xf32>, vector<8x21xf32> -> vector<8x21xf32>
    %c280 = arith.constant 280 : index
    %c0_13 = arith.constant 0 : index
    %18 = vector.load %arg3[%c280, %c0_13] : memref<536x128xf32, #tpu.memory_space<vmem>>, vector<24x8xf32>
    %cst_14 = arith.constant dense<0.000000e+00> : vector<24x21xf32>
    %19 = tpu.matmul %18, %17, %cst_14 {dimension_numbers = #tpu.dot_dimension_numbers<[1], [0], [0], [1], [0, 0, 1, 1], [], []>} : vector<24x8xf32>, vector<8x21xf32>, vector<24x21xf32> -> vector<24x21xf32>
    %20 = arith.addf %15, %19 : vector<24x21xf32>
    %21 = vector.extract_strided_slice %8 {offsets = [0, 512], sizes = [8, 256], strides = [1, 1]} : vector<8x1024xf32> to vector<8x256xf32>
    %cst_15 = arith.constant dense<0.000000e+00> : vector<8x21xf32>
    %22 = tpu.matmul %21, %9, %cst_15 {dimension_numbers = #tpu.dot_dimension_numbers<[1], [0], [0], [1], [0, 0, 1, 1], [], []>} : vector<8x256xf32>, vector<256x21xf32>, vector<8x21xf32> -> vector<8x21xf32>
    %c304 = arith.constant 304 : index
    %c0_16 = arith.constant 0 : index
    %23 = vector.load %arg3[%c304, %c0_16] : memref<536x128xf32, #tpu.memory_space<vmem>>, vector<24x8xf32>
    %cst_17 = arith.constant dense<0.000000e+00> : vector<24x21xf32>
    %24 = tpu.matmul %23, %22, %cst_17 {dimension_numbers = #tpu.dot_dimension_numbers<[1], [0], [0], [1], [0, 0, 1, 1], [], []>} : vector<24x8xf32>, vector<8x21xf32>, vector<24x21xf32> -> vector<24x21xf32>
    %25 = arith.addf %20, %24 : vector<24x21xf32>
    %26 = vector.extract_strided_slice %8 {offsets = [0, 768], sizes = [8, 256], strides = [1, 1]} : vector<8x1024xf32> to vector<8x256xf32>
    %cst_18 = arith.constant dense<0.000000e+00> : vector<8x21xf32>
    %27 = tpu.matmul %26, %9, %cst_18 {dimension_numbers = #tpu.dot_dimension_numbers<[1], [0], [0], [1], [0, 0, 1, 1], [], []>} : vector<8x256xf32>, vector<256x21xf32>, vector<8x21xf32> -> vector<8x21xf32>
    %c328 = arith.constant 328 : index
    %c0_19 = arith.constant 0 : index
    %28 = vector.load %arg3[%c328, %c0_19] : memref<536x128xf32, #tpu.memory_space<vmem>>, vector<24x8xf32>
    %cst_20 = arith.constant dense<0.000000e+00> : vector<24x21xf32>
    %29 = tpu.matmul %28, %27, %cst_20 {dimension_numbers = #tpu.dot_dimension_numbers<[1], [0], [0], [1], [0, 0, 1, 1], [], []>} : vector<24x8xf32>, vector<8x21xf32>, vector<24x21xf32> -> vector<24x21xf32>
    %30 = arith.addf %25, %29 : vector<24x21xf32>
    %c352 = arith.constant 352 : index
    %c0_21 = arith.constant 0 : index
    %31 = vector.load %arg3[%c352, %c0_21] : memref<536x128xf32, #tpu.memory_space<vmem>>, vector<24x1xf32>
    %32 = vector.broadcast %31 : vector<24x1xf32> to vector<24x21xf32>
    %33 = arith.addf %30, %32 : vector<24x21xf32>
    %cst_22 = arith.constant 0.000000e+00 : f32
    %34 = vector.broadcast %cst_22 : f32 to vector<24x21xf32>
    %35 = arith.cmpf ogt, %33, %34 : vector<24x21xf32>
    %cst_23 = arith.constant 0.00999999977 : f32
    %36 = vector.broadcast %cst_23 : f32 to vector<24x21xf32>
    %37 = arith.mulf %36, %33 : vector<24x21xf32>
    %38 = arith.select %35, %33, %37 : vector<24x21xi1>, vector<24x21xf32>
    %c376 = arith.constant 376 : index
    %c0_24 = arith.constant 0 : index
    %39 = vector.load %arg3[%c376, %c0_24] : memref<536x128xf32, #tpu.memory_space<vmem>>, vector<21x10xf32>
    %cst_25 = arith.constant dense<0.000000e+00> : vector<24x10xf32>
    %40 = tpu.matmul %38, %39, %cst_25 {dimension_numbers = #tpu.dot_dimension_numbers<[1], [0], [0], [1], [0, 0, 1, 1], [], []>} : vector<24x21xf32>, vector<21x10xf32>, vector<24x10xf32> -> vector<24x10xf32>
    %c400 = arith.constant 400 : index
    %c0_26 = arith.constant 0 : index
    %41 = vector.load %arg3[%c400, %c0_26] : memref<536x128xf32, #tpu.memory_space<vmem>>, vector<12x24xf32>
    %cst_27 = arith.constant dense<0.000000e+00> : vector<12x10xf32>
    %42 = tpu.matmul %41, %40, %cst_27 {dimension_numbers = #tpu.dot_dimension_numbers<[1], [0], [0], [1], [0, 0, 1, 1], [], []>} : vector<12x24xf32>, vector<24x10xf32>, vector<12x10xf32> -> vector<12x10xf32>
    %c416 = arith.constant 416 : index
    %c0_28 = arith.constant 0 : index
    %43 = vector.load %arg3[%c416, %c0_28] : memref<536x128xf32, #tpu.memory_space<vmem>>, vector<12x1xf32>
    %44 = vector.broadcast %43 : vector<12x1xf32> to vector<12x10xf32>
    %45 = arith.addf %42, %44 : vector<12x10xf32>
    %cst_29 = arith.constant 0.000000e+00 : f32
    %46 = vector.broadcast %cst_29 : f32 to vector<12x10xf32>
    %47 = arith.cmpf ogt, %45, %46 : vector<12x10xf32>
    %cst_30 = arith.constant 0.00999999977 : f32
    %48 = vector.broadcast %cst_30 : f32 to vector<12x10xf32>
    %49 = arith.mulf %48, %45 : vector<12x10xf32>
    %50 = arith.select %47, %45, %49 : vector<12x10xi1>, vector<12x10xf32>
    %c432 = arith.constant 432 : index
    %c0_31 = arith.constant 0 : index
    %51 = vector.load %arg3[%c432, %c0_31] : memref<536x128xf32, #tpu.memory_space<vmem>>, vector<1x10xf32>
    %cst_32 = arith.constant dense<0.000000e+00> : vector<1x12xf32>
    %52 = tpu.matmul %51, %50, %cst_32 {dimension_numbers = #tpu.dot_dimension_numbers<[1], [1], [0], [0], [0, 0, 1, 0], [], []>} : vector<1x10xf32>, vector<12x10xf32>, vector<1x12xf32> -> vector<1x12xf32>
    %c440 = arith.constant 440 : index
    %c0_33 = arith.constant 0 : index
    %53 = vector.load %arg3[%c440, %c0_33] : memref<536x128xf32, #tpu.memory_space<vmem>>, vector<12x64xf32>
    %cst_34 = arith.constant dense<0.000000e+00> : vector<1x64xf32>
    %54 = tpu.matmul %52, %53, %cst_34 {dimension_numbers = #tpu.dot_dimension_numbers<[1], [0], [0], [1], [0, 0, 1, 1], [], []>} : vector<1x12xf32>, vector<12x64xf32>, vector<1x64xf32> -> vector<1x64xf32>
    %c456 = arith.constant 456 : index
    %c0_35 = arith.constant 0 : index
    %55 = vector.load %arg3[%c456, %c0_35] : memref<536x128xf32, #tpu.memory_space<vmem>>, vector<1x64xf32>
    %56 = arith.addf %54, %55 : vector<1x64xf32>
    %cst_36 = arith.constant 0.000000e+00 : f32
    %57 = vector.broadcast %cst_36 : f32 to vector<1x64xf32>
    %58 = arith.maximumf %56, %57 : vector<1x64xf32>
    %c464 = arith.constant 464 : index
    %c0_37 = arith.constant 0 : index
    %59 = vector.load %arg3[%c464, %c0_37] : memref<536x128xf32, #tpu.memory_space<vmem>>, vector<64x6xf32>
    %cst_38 = arith.constant dense<0.000000e+00> : vector<1x6xf32>
    %60 = tpu.matmul %58, %59, %cst_38 {dimension_numbers = #tpu.dot_dimension_numbers<[1], [0], [0], [1], [0, 0, 1, 1], [], []>} : vector<1x64xf32>, vector<64x6xf32>, vector<1x6xf32> -> vector<1x6xf32>
    %c528 = arith.constant 528 : index
    %c0_39 = arith.constant 0 : index
    %61 = vector.load %arg3[%c528, %c0_39] : memref<536x128xf32, #tpu.memory_space<vmem>>, vector<1x6xf32>
    %62 = arith.addf %60, %61 : vector<1x6xf32>
    %c0_40 = arith.constant 0 : index
    %c0_41 = arith.constant 0 : index
    %c0_42 = arith.constant 0 : index
    %63 = vector.load %arg4[%c0_40, %c0_41, %c0_42] : memref<1x1x6xf32, #tpu.memory_space<vmem>>, vector<1x1x6xf32>
    %64 = vector.shape_cast %63 : vector<1x1x6xf32> to vector<1x6xf32>
    %65 = vector.shape_cast %62 : vector<1x6xf32> to vector<1x1x6xf32>
    tpu.vector_store %arg4[%c0_40, %c0_41, %c0_42], %65 {strides = array<i32>} : memref<1x1x6xf32, #tpu.memory_space<vmem>>, vector<1x1x6xf32>,
    return
  }
  func.func @transform_0(%arg0: i32) -> (i32, i32, i32) {
    %c0_i32 = arith.constant 0 : i32
    %c0_i32_0 = arith.constant 0 : i32
    %c0_i32_1 = arith.constant 0 : i32
    return %arg0, %c0_i32, %c0_i32_0 : i32, i32, i32
  }
  func.func @transform_1(%arg0: i32) -> (i32, i32) {
    %c0_i32 = arith.constant 0 : i32
    %c0_i32_0 = arith.constant 0 : i32
    %c0_i32_1 = arith.constant 0 : i32
    return %c0_i32, %c0_i32_0 : i32, i32
  }
  func.func @transform_2(%arg0: i32) -> (i32, i32) {
    %c0_i32 = arith.constant 0 : i32
    %c0_i32_0 = arith.constant 0 : i32
    %c0_i32_1 = arith.constant 0 : i32
    return %c0_i32, %c0_i32_0 : i32, i32
  }
  func.func @transform_3(%arg0: i32) -> (i32, i32, i32) {
    %c0_i32 = arith.constant 0 : i32
    %c0_i32_0 = arith.constant 0 : i32
    %c0_i32_1 = arith.constant 0 : i32
    return %arg0, %c0_i32, %c0_i32_0 : i32, i32, i32
  }
}

</mosaic_0001>

<bundles_post_ra>
// kernel: _lambda_.1
= control target key start
LH: loop header
LB: loop body
LE: loop exit
PB: predicated region body
PF: predicated region fallthrough
CT: control target
= control target key end

     0   :  { %8 = vsyncpa [#allocation3], 0  ;;  %s2476_s0 = inlined_call_operand.vmem [shape: f32[1,8,65], index: 0, kind: input, shape index: {}]   ;;  %s2477_s1 = inlined_call_operand.hbm [shape: f32[65,1024], index: 1, kind: input, shape index: {}]   ;;  %s2478_s2 = inlined_call_operand.hbm [shape: f32[536,128], index: 2, kind: input, shape index: {}]   ;;  %s2479_s3 = inlined_call_operand.vmem [shape: f32[1,1,6], index: 3, kind: output, shape index: {}]  }
   0x1   :  { %9 = vsyncpa [#allocation5], 0  ;;  %s2221_s12 = smov [#allocation2]   ;;  %s2173_s16 = scalar_lea.hbm %s2477_s1, 9216 }
   0x2   :  { %s17_s13 = sshll.u32 %s2221_s12, 4  ;;  %p2174_p0 = scmp.ne.s32.totalorder %s2477_s1, %s2173_s16  ;;  %s18_s13 = int_to_ptr.vmem [resolvable:$true] %s17_s13 }
   0x3   :  { %p2177_p1 = scmp.lt.u32.totalorder %s2173_s16, %s2477_s1 }
   0x5   :  { %p2179_p2 = pnand %p2177_p1, %p2174_p0 }
   0x7   :  { %2182 = shalt.err (!%p2179_p2)
}
   0x8   :  { %s2183_s21 = scalar_lea.vmem %s18_s13, 9216  ;;  %p2188_p4 = scmp.lt.s32.totalorder %s18_s13, %s18_s13 }
   0x9   :  { %p2184_p3 = scmp.ne.s32.totalorder %s18_s13, %s2183_s21  ;;  %p2189_p5 = scmp.lt.s32.totalorder %s2183_s21, %s2183_s21 }
   0xb   :  { %p2190_p6 = por %p2189_p5, %p2188_p4 }
   0xd   :  { %p2191_p7 = pnand %p2190_p6, %p2184_p3 }
   0xf   :  { %2194 = shalt.err (!%p2191_p7)
}
  0x10   :  { %s2222_s22 = smov 1024   ;;  %s2223_s23 = smov 64  }
  0x11   :  { %23 = dma.hbm_to_vmem [thread:$0]  %s2477_s1, 9216, %s18_s13, [#allocation3], %s2222_s22, %s2222_s22, %s2223_s23  }
  0x12   :  { %s2224_s26 = smov [#allocation4]   ;;  %s2195_s30 = scalar_lea.hbm %s2478_s2, 8576 }
  0x13   :  { %s29_s27 = sshll.u32 %s2224_s26, 4  ;;  %p2196_p8 = scmp.ne.s32.totalorder %s2478_s2, %s2195_s30  ;;  %s30_s27 = int_to_ptr.vmem [resolvable:$true] %s29_s27 }
  0x14   :  { %p2199_p9 = scmp.lt.u32.totalorder %s2195_s30, %s2478_s2 }
  0x16   :  { %p2201_p10 = pnand %p2199_p9, %p2196_p8 }
  0x18   :  { %2204 = shalt.err (!%p2201_p10)
}
  0x19   :  { %s2205_s8 = scalar_lea.vmem %s30_s27, 8576  ;;  %p2210_p12 = scmp.lt.s32.totalorder %s30_s27, %s30_s27 }
  0x1a   :  { %p2206_p11 = scmp.ne.s32.totalorder %s30_s27, %s2205_s8  ;;  %p2211_p13 = scmp.lt.s32.totalorder %s2205_s8, %s2205_s8 }
  0x1c   :  { %p2212_p0 = por %p2211_p13, %p2210_p12 }
  0x1e   :  { %p2213_p1 = pnand %p2212_p0, %p2206_p11 }
  0x20   :  { %2216 = shalt.err (!%p2213_p1)
}
  0x21   :  { %s2225_s1 = smov 128   ;;  %s2226_s9 = smov 8  }
  0x22   :  { %35 = dma.hbm_to_vmem [thread:$0]  %s2478_s2, 8576, %s30_s27, [#allocation5], %s2225_s1, %s2225_s1, %s2226_s9  }
  0x23   :  { %2217 = dma.done.wait [#allocation3], 9216  }
  0x24   :  { %2218 = vsyncadd [#allocation3], 4294958080 }
  0x25   :  { %2219 = dma.done.wait [#allocation5], 8576  }
  0x26   :  { %2220 = vsyncadd [#allocation5], 4294958720  ;;  %v2227_v0 = vmov 0.0   ;;  %v46_v1 = vld [vmem:[#allocation2 + $0x18] sm:$0xff]  ;;  %v44_v3 = vld [vmem:[#allocation2 + $0x8] sm:$0xff]  ;;  %vm119_vm0 = vcmask 1040384  }
  0x27   :  { %279 = vmatprep.mubr.f32.mxu1 %v2227_v0  ;;  %208 = vmatprep.mubr.f32.mxu0 %v2227_v0  ;;  %v54_v2 = vld [vmem:[#allocation2 + $0x58] sm:$0xff]  ;;  %v52_v5 = vld [vmem:[#allocation2 + $0x48] sm:$0xff]  ;;  %v45_v6 = vld [vmem:[#allocation2 + $0x10] sm:$0xff]  ;;  %vm115_vm1 = vcmask 531456   ;;  %vm2228_vm6 = vmmov 0   ;;  %vm630_vm7 = vcmask 64512  }
  0x28   :  { %v1957_v4 = vpack.c.bf16 %v54_v2, %v46_v1  ;;  %v53_v7 = vld [vmem:[#allocation2 + $0x50] sm:$0xff]  ;;  %v1941_v8 = vpack.c.bf16 %v52_v5, %v44_v3  ;;  %v43_v10 = vld [vmem:[#allocation2] sm:$0xff]  ;;  %v62_v12 = vld [vmem:[#allocation2 + $0x98] sm:$0xff]  ;;  %vm1182_vm12 = vcmask 1044480   ;;  %vm1172_vm14 = vcmask 171008  }
  0x29   :  { %v1959_v9 = vpack.c.bf16 %v53_v7, %v45_v6  ;;  %v51_v11 = vld [vmem:[#allocation2 + $0x40] sm:$0xff]  ;;  %v70_v14 = vld [vmem:[#allocation2 + $0xd8] sm:$0xff]  ;;  %v60_v15 = vld [vmem:[#allocation2 + $0x88] sm:$0xff] }
  0x2a   :  { %1958 = vmatprep.subr.bf16.mxu1 %v1957_v4  ;;  %v1943_v13 = vpack.c.bf16 %v51_v11, %v43_v10  ;;  %v68_v16 = vld [vmem:[#allocation2 + $0xc8] sm:$0xff]  ;;  %1942 = vmatprep.subr.bf16.mxu0 %v1941_v8  ;;  %v1961_v17 = vpack.c.bf16 %v70_v14, %v62_v12  ;;  %v61_v19 = vld [vmem:[#allocation2 + $0x90] sm:$0xff]  ;;  %v59_v21 = vld [vmem:[#allocation2 + $0x80] sm:$0xff] }
  0x2b   :  { %1960 = vmatpush1.bf16.msra.mxu1 %v1959_v9  ;;  %v1945_v18 = vpack.c.bf16 %v68_v16, %v60_v15  ;;  %v69_v20 = vld [vmem:[#allocation2 + $0xd0] sm:$0xff]  ;;  %v67_v23 = vld [vmem:[#allocation2 + $0xc0] sm:$0xff]  ;;  %v78_v24 = vld [vmem:[#allocation2 + $0x118] sm:$0xff] }
  0x2c   :  { %1944 = vmatpush1.bf16.msra.mxu0 %v1943_v13  ;;  %v1963_v22 = vpack.c.bf16 %v69_v20, %v61_v19  ;;  %v86_v25 = vld [vmem:[#allocation2 + $0x158] sm:$0xff]  ;;  %1962 = vmatprep.subr.bf16.mxu1 %v1961_v17  ;;  %v1947_v26 = vpack.c.bf16 %v67_v23, %v59_v21  ;;  %v76_v28 = vld [vmem:[#allocation2 + $0x108] sm:$0xff]  ;;  %v77_v30 = vld [vmem:[#allocation2 + $0x110] sm:$0xff] }
  0x2d   :  { %1946 = vmatprep.subr.bf16.mxu0 %v1945_v18  ;;  %v1965_v27 = vpack.c.bf16 %v86_v25, %v78_v24  ;;  %v84_v29 = vld [vmem:[#allocation2 + $0x148] sm:$0xff]  ;;  %v85_v32 = vld [vmem:[#allocation2 + $0x150] sm:$0xff]  ;;  %v75_v33 = vld [vmem:[#allocation2 + $0x100] sm:$0xff] }
  0x2e   :  { %v1949_v31 = vpack.c.bf16 %v84_v29, %v76_v28  ;;  %v83_v34 = vld [vmem:[#allocation2 + $0x140] sm:$0xff]  ;;  %v1967_v35 = vpack.c.bf16 %v85_v32, %v77_v30  ;;  %v94_v36 = vld [vmem:[#allocation2 + $0x198] sm:$0xff]  ;;  %v92_v38 = vld [vmem:[#allocation2 + $0x188] sm:$0xff] }
  0x2f   :  { %1964 = vmatpush1.bf16.msra.mxu1 %v1963_v22  ;;  %v102_v37 = vld [vmem:[#allocation2 + $0x1d8] sm:$0xff]  ;;  %v1951_v39 = vpack.c.bf16 %v83_v34, %v75_v33  ;;  %v100_v41 = vld [vmem:[#allocation2 + $0x1c8] sm:$0xff]  ;;  %v93_v42 = vld [vmem:[#allocation2 + $0x190] sm:$0xff] }
  0x30   :  { %1948 = vmatpush1.bf16.msra.mxu0 %v1947_v26  ;;  %1966 = vmatprep.subr.bf16.mxu1 %v1965_v27  ;;  %v1969_v40 = vpack.c.bf16 %v102_v37, %v94_v36  ;;  %v101_v43 = vld [vmem:[#allocation2 + $0x1d0] sm:$0xff]  ;;  %v1953_v44 = vpack.c.bf16 %v100_v41, %v92_v38  ;;  %v91_v45 = vld [vmem:[#allocation2 + $0x180] sm:$0xff]  ;;  %v110_v49 = vld [vmem:[#allocation2 + $0x218] sm:$0x1] }
  0x31   :  { %1950 = vmatprep.subr.bf16.mxu0 %v1949_v31  ;;  %v99_v46 = vld [vmem:[#allocation2 + $0x1c0] sm:$0xff]  ;;  %v1971_v47 = vpack.c.bf16 %v101_v43, %v93_v42  ;;  %v108_v50 = vld [vmem:[#allocation2 + $0x208] sm:$0x1]  ;;  %v50_v51 = vld [vmem:[#allocation2 + $0x38] sm:$0xff] }
  0x32   :  { %v1955_v48 = vpack.c.bf16 %v99_v46, %v91_v45  ;;  %v109_v52 = vld [vmem:[#allocation2 + $0x210] sm:$0x1]  ;;  %v58_v53 = vld [vmem:[#allocation2 + $0x78] sm:$0xff]  ;;  %v107_v56 = vld [vmem:[#allocation2 + $0x200] sm:$0x1] }
  0x33   :  { %1968 = vmatpush1.bf16.msra.mxu1 %v1967_v35  ;;  %v49_v54 = vld [vmem:[#allocation2 + $0x30] sm:$0xff]  ;;  %v48_v57 = vld [vmem:[#allocation2 + $0x28] sm:$0xff]  ;;  %v47_v59 = vld [vmem:[#allocation2 + $0x20] sm:$0xff]  ;;  %v1989_v1 = vpack.c.bf16 %v58_v53, %v50_v51 }
  0x34   :  { %1952 = vmatpush1.bf16.msra.mxu0 %v1951_v39  ;;  %1970 = vmatprep.subr.bf16.mxu1 %v1969_v40  ;;  %v57_v55 = vld [vmem:[#allocation2 + $0x70] sm:$0xff]  ;;  %v56_v58 = vld [vmem:[#allocation2 + $0x68] sm:$0xff]  ;;  %v55_v60 = vld [vmem:[#allocation2 + $0x60] sm:$0xff] }
  0x35   :  { %1954 = vmatprep.subr.bf16.mxu0 %v1953_v44  ;;  %v66_v61 = vld [vmem:[#allocation2 + $0xb8] sm:$0xff]  ;;  %v2283_v63 = vld [vmem:[%s2476_s0] sm:$0xff]  ;;  %v64_v2 = vld [vmem:[#allocation2 + $0xa8] sm:$0xff]  ;;  %v1991_v4 = vpack.c.bf16 %v57_v55, %v49_v54  ;;  %v1973_v5 = vpack.c.bf16 %v56_v58, %v48_v57  ;;  %v1975_v6 = vpack.c.bf16 %v55_v60, %v47_v59 }
  0x36   :  { %v74_v62 = vld [vmem:[#allocation2 + $0xf8] sm:$0xff]  ;;  %v72_v3 = vld [vmem:[#allocation2 + $0xe8] sm:$0xff]  ;;  %v65_v8 = vld [vmem:[#allocation2 + $0xb0] sm:$0xff] }
  0x37   :  { %1972 = vmatpush1.bf16.msra.mxu1 %v1971_v47  ;;  %v1993_v7 = vpack.c.bf16 %v74_v62, %v66_v61  ;;  %v73_v9 = vld [vmem:[#allocation2 + $0xf0] sm:$0xff]  ;;  %v63_v10 = vld [vmem:[#allocation2 + $0xa0] sm:$0xff]  ;;  %v1977_v11 = vpack.c.bf16 %v72_v3, %v64_v2  ;;  %v82_v13 = vld [vmem:[#allocation2 + $0x138] sm:$0xff] }
  0x38   :  { %1956 = vmatpush1.bf16.msra.mxu0 %v1955_v48  ;;  %1625 = vmatprep.subr.msk.mxu1 %vm119_vm0, %v110_v49  ;;  %v71_v12 = vld [vmem:[#allocation2 + $0xe0] sm:$0xff]  ;;  %v90_v14 = vld [vmem:[#allocation2 + $0x178] sm:$0xff]  ;;  %v80_v15 = vld [vmem:[#allocation2 + $0x128] sm:$0xff]  ;;  %v1995_v17 = vpack.c.bf16 %v73_v9, %v65_v8 }
  0x39   :  { %1622 = vmatprep.subr.msk.mxu0 %vm119_vm0, %v108_v50  ;;  %v88_v16 = vld [vmem:[#allocation2 + $0x168] sm:$0xff]  ;;  %v1979_v18 = vpack.c.bf16 %v71_v12, %v63_v10  ;;  %v1997_v19 = vpack.c.bf16 %v90_v14, %v82_v13  ;;  %v81_v20 = vld [vmem:[#allocation2 + $0x130] sm:$0xff]  ;;  %v79_v22 = vld [vmem:[#allocation2 + $0x120] sm:$0xff] }
  0x3a   :  { %v89_v21 = vld [vmem:[#allocation2 + $0x170] sm:$0xff]  ;;  %v1981_v23 = vpack.c.bf16 %v88_v16, %v80_v15  ;;  %v87_v24 = vld [vmem:[#allocation2 + $0x160] sm:$0xff]  ;;  %v98_v25 = vld [vmem:[#allocation2 + $0x1b8] sm:$0xff] }
  0x3b   :  { %1626 = vmatpush1.msk.msra.mxu1 %vm119_vm0, %v109_v52  ;;  %v106_v26 = vld [vmem:[#allocation2 + $0x1f8] sm:$0xff]  ;;  %v96_v27 = vld [vmem:[#allocation2 + $0x1a8] sm:$0xff]  ;;  %v1999_v29 = vpack.c.bf16 %v89_v21, %v81_v20  ;;  %v1983_v30 = vpack.c.bf16 %v87_v24, %v79_v22  ;;  %v97_v32 = vld [vmem:[#allocation2 + $0x1b0] sm:$0xff] }
  0x3c   :  { %1623 = vmatpush1.msk.msra.mxu0 %vm119_vm0, %v107_v56  ;;  %1627 = vmatmul.mubr.msk.f32.vlgmr.msra.gmra.mrb[0].mxu1 %vm115_vm1, %v2283_v63  ;;  %v104_v28 = vld [vmem:[#allocation2 + $0x1e8] sm:$0xff]  ;;  %v2001_v31 = vpack.c.bf16 %v106_v26, %v98_v25  ;;  %v105_v33 = vld [vmem:[#allocation2 + $0x1f0] sm:$0xff]  ;;  %v95_v35 = vld [vmem:[#allocation2 + $0x1a0] sm:$0xff] }
  0x3d   :  { %1624 = vmatmul.mubr.msk.f32.vlgmr.msra.gmra.mrb[0].mxu0 %vm115_vm1, %v2283_v63  ;;  %1990 = vmatprep.subr.bf16.mxu1 %v1989_v1  ;;  %v1985_v34 = vpack.c.bf16 %v104_v28, %v96_v27  ;;  %v103_v36 = vld [vmem:[#allocation2 + $0x1e0] sm:$0xff]  ;;  %v2003_v37 = vpack.c.bf16 %v105_v33, %v97_v32  ;;  %v114_v39 = vld [vmem:[#allocation2 + $0x238] sm:$0x1]  ;;  %v112_v40 = vld [vmem:[#allocation2 + $0x228] sm:$0x1] }
  0x3e   :  { %1992 = vmatpush1.bf16.msra.mxu1 %v1991_v4  ;;  %1974 = vmatprep.subr.bf16.mxu0 %v1973_v5  ;;  %v1987_v38 = vpack.c.bf16 %v103_v36, %v95_v35  ;;  %v468_v41 = vld [vmem:[#allocation4 + $0x80] sm:$0xff]  ;;  %v469_v42 = vld [vmem:[#allocation4 + $0x88] sm:$0xff]  ;;  %v113_v45 = vld [vmem:[#allocation2 + $0x230] sm:$0x1] }
  0x3f   :  { %1976 = vmatpush1.bf16.msra.mxu0 %v1975_v6  ;;  %1994 = vmatprep.subr.bf16.mxu1 %v1993_v7  ;;  %v452_v43 = vld [vmem:[#allocation4] sm:$0xff]  ;;  %v453_v44 = vld [vmem:[#allocation4 + $0x8] sm:$0xff]  ;;  %v470_v46 = vld [vmem:[#allocation4 + $0x90] sm:$0xff]  ;;  %v2295_v49 = vpack.c.bf16 %v469_v42, %v468_v41 }
  0x40   :  { %1978 = vmatprep.subr.bf16.mxu0 %v1977_v11  ;;  %421 = vmatprep.mubr.f32.mxu1 %v2227_v0  ;;  %v471_v47 = vld [vmem:[#allocation4 + $0x98] sm:$0xff]  ;;  %v111_v48 = vld [vmem:[#allocation2 + $0x220] sm:$0x1]  ;;  %v2297_v50 = vpack.c.bf16 %v453_v44, %v452_v43  ;;  %v454_v52 = vld [vmem:[#allocation4 + $0x10] sm:$0xff] }
  0x41   :  { %350 = vmatprep.mubr.f32.mxu0 %v2227_v0  ;;  %v2300_v51 = vpack.c.bf16 %v471_v47, %v470_v46  ;;  %v455_v53 = vld [vmem:[#allocation4 + $0x18] sm:$0xff]  ;;  %v472_v54 = vld [vmem:[#allocation4 + $0xa0] sm:$0xff]  ;;  %v473_v55 = vld [vmem:[#allocation4 + $0xa8] sm:$0xff] }
  0x42   :  { %1996 = vmatpush1.bf16.msra.mxu1 %v1995_v17  ;;  %v2310_v56 = vpack.c.bf16 %v455_v53, %v454_v52  ;;  %v2314_v57 = vpack.c.bf16 %v473_v55, %v472_v54  ;;  %v456_v58 = vld [vmem:[#allocation4 + $0x20] sm:$0xff]  ;;  %v457_v59 = vld [vmem:[#allocation4 + $0x28] sm:$0xff]  ;;  %v474_v60 = vld [vmem:[#allocation4 + $0xb0] sm:$0xff] }
  0x43   :  { %1980 = vmatpush1.bf16.msra.mxu0 %v1979_v18  ;;  %1998 = vmatprep.subr.bf16.mxu1 %v1997_v19  ;;  %v475_v61 = vld [vmem:[#allocation4 + $0xb8] sm:$0xff]  ;;  %v2318_v62 = vpack.c.bf16 %v457_v59, %v456_v58  ;;  %v458_v1 = vld [vmem:[#allocation4 + $0x30] sm:$0xff]  ;;  %v476_v3 = vld [vmem:[#allocation4 + $0xc0] sm:$0xff] }
  0x44   :  { %1982 = vmatprep.subr.bf16.mxu0 %v1981_v23  ;;  %v459_v2 = vld [vmem:[#allocation4 + $0x38] sm:$0xff]  ;;  %v477_v4 = vld [vmem:[#allocation4 + $0xc8] sm:$0xff]  ;;  %v460_v7 = vld [vmem:[#allocation4 + $0x40] sm:$0xff] }
  0x45   :  { %v2326_v5 = vpack.c.bf16 %v459_v2, %v458_v1  ;;  %v2330_v6 = vpack.c.bf16 %v477_v4, %v476_v3  ;;  %v461_v8 = vld [vmem:[#allocation4 + $0x48] sm:$0xff]  ;;  %v478_v9 = vld [vmem:[#allocation4 + $0xd0] sm:$0xff]  ;;  %v479_v10 = vld [vmem:[#allocation4 + $0xd8] sm:$0xff] }
  0x46   :  { %2000 = vmatpush1.bf16.msra.mxu1 %v1999_v29  ;;  %v2334_v11 = vpack.c.bf16 %v461_v8, %v460_v7  ;;  %v2338_v12 = vpack.c.bf16 %v479_v10, %v478_v9  ;;  %v462_v13 = vld [vmem:[#allocation4 + $0x50] sm:$0xff]  ;;  %v463_v14 = vld [vmem:[#allocation4 + $0x58] sm:$0xff]  ;;  %v480_v15 = vld [vmem:[#allocation4 + $0xe0] sm:$0xff] }
  0x47   :  { %1984 = vmatpush1.bf16.msra.mxu0 %v1983_v30  ;;  %2002 = vmatprep.subr.bf16.mxu1 %v2001_v31  ;;  %v481_v16 = vld [vmem:[#allocation4 + $0xe8] sm:$0xff]  ;;  %v2342_v17 = vpack.c.bf16 %v463_v14, %v462_v13  ;;  %v464_v19 = vld [vmem:[#allocation4 + $0x60] sm:$0xff]  ;;  %v482_v22 = vld [vmem:[#allocation4 + $0xf0] sm:$0xff] }
  0x48   :  { %1986 = vmatprep.subr.bf16.mxu0 %v1985_v34  ;;  %v2346_v18 = vpack.c.bf16 %v481_v16, %v480_v15  ;;  %v465_v20 = vld [vmem:[#allocation4 + $0x68] sm:$0xff]  ;;  %v483_v23 = vld [vmem:[#allocation4 + $0xf8] sm:$0xff]  ;;  %v466_v25 = vld [vmem:[#allocation4 + $0x70] sm:$0xff] }
  0x49   :  { %v2350_v21 = vpack.c.bf16 %v465_v20, %v464_v19  ;;  %v2357_v24 = vpack.c.bf16 %v483_v23, %v482_v22  ;;  %v467_v26 = vld [vmem:[#allocation4 + $0x78] sm:$0xff]  ;;  %v554_v54 = vld [vmem:[#allocation4 + $0x100] sm:$0xff]  ;;  %v555_v59 = vld [vmem:[#allocation4 + $0x108] sm:$0xff] }
  0x4a   :  { %2004 = vmatpush1.bf16.msra.mxu1 %v2003_v37  ;;  %v2359_v27 = vpack.c.bf16 %v467_v26, %v466_v25  ;;  %v628_v55 = vld [vmem:[#allocation4 + $0x120] sm:$0xff]  ;;  %v556_v1 = vld [vmem:[#allocation4 + $0x110] sm:$0xff] }
  0x4b   :  { %1988 = vmatpush1.bf16.msra.mxu0 %v1987_v38  ;;  %1631 = vmatprep.subr.msk.mxu1 %vm119_vm0, %v114_v39 }
  0x4c   :  { %1628 = vmatprep.subr.msk.mxu0 %vm119_vm0, %v112_v40 }
  0x4e   :  { %1632 = vmatpush1.msk.msra.mxu1 %vm119_vm0, %v113_v45 }
  0x4f   :  { %1633 = vmatmul.mubr.msk.f32.vlgmr.msra.gmra.mrb[2].mxu1 %vm115_vm1, %v2283_v63  ;;  %1629 = vmatpush1.msk.msra.mxu0 %vm119_vm0, %v111_v48  ;;  %v627_v48 = vld [vmem:[#allocation4 + $0x118] sm:$0xff] }
  0x50   :  { %2038 = vmatprep.subr.bf16.mxu1 %v2295_v49  ;;  %2006 = vmatprep.subr.bf16.mxu0 %v2295_v49 }
  0x51   :  { %2040 = vmatpush3.bf16.msra.mxu1 %v2297_v50  ;;  %1630 = vmatmul.mubr.msk.f32.vlgmr.msra.gmra.mrb[2].mxu0 %vm115_vm1, %v2283_v63  ;;  %v2322_v63 = vpack.c.bf16 %v475_v61, %v474_v60  ;;  %v629_v60 = vld [vmem:[#allocation4 + $0x128] sm:$0xff]  ;;  %vm1280_vm1 = vcmask 195584  }
  0x52   :  { %2008 = vmatpush3.bf16.msra.mxu0 %v2297_v50  ;;  %2042 = vmatprep.subr.bf16.mxu1 %v2300_v51 }
  0x53   :  { %2010 = vmatprep.subr.bf16.mxu0 %v2300_v51 }
  0x55   :  { %2044 = vmatpush3.bf16.msra.mxu1 %v2310_v56 }
  0x56   :  { %2012 = vmatpush3.bf16.msra.mxu0 %v2310_v56  ;;  %2046 = vmatprep.subr.bf16.mxu1 %v2314_v57 }
  0x57   :  { %2014 = vmatprep.subr.bf16.mxu0 %v2314_v57 }
  0x59   :  { %2048 = vmatpush3.bf16.msra.mxu1 %v2318_v62 }
  0x5a   :  { %2016 = vmatpush3.bf16.msra.mxu0 %v2318_v62  ;;  %2050 = vmatprep.subr.bf16.mxu1 %v2322_v63 }
  0x5b   :  { %2018 = vmatprep.subr.bf16.mxu0 %v2322_v63 }
  0x5d   :  { %2052 = vmatpush3.bf16.msra.mxu1 %v2326_v5 }
  0x5e   :  { %2020 = vmatpush3.bf16.msra.mxu0 %v2326_v5  ;;  %2054 = vmatprep.subr.bf16.mxu1 %v2330_v6 }
  0x5f   :  { %2022 = vmatprep.subr.bf16.mxu0 %v2330_v6 }
  0x61   :  { %2056 = vmatpush3.bf16.msra.mxu1 %v2334_v11 }
  0x62   :  { %2024 = vmatpush3.bf16.msra.mxu0 %v2334_v11  ;;  %2058 = vmatprep.subr.bf16.mxu1 %v2338_v12 }
  0x63   :  { %2026 = vmatprep.subr.bf16.mxu0 %v2338_v12 }
  0x65   :  { %2060 = vmatpush3.bf16.msra.mxu1 %v2342_v17 }
  0x66   :  { %2028 = vmatpush3.bf16.msra.mxu0 %v2342_v17  ;;  %2062 = vmatprep.subr.bf16.mxu1 %v2346_v18 }
  0x67   :  { %2030 = vmatprep.subr.bf16.mxu0 %v2346_v18 }
  0x69   :  { %2064 = vmatpush3.bf16.msra.mxu1 %v2350_v21 }
  0x6a   :  { %2032 = vmatpush3.bf16.msra.mxu0 %v2350_v21  ;;  %2066 = vmatprep.subr.bf16.mxu1 %v2357_v24 }
  0x6b   :  { %2034 = vmatprep.subr.bf16.mxu0 %v2357_v24 }
  0x6d   :  { %2068 = vmatpush3.bf16.msra.mxu1 %v2359_v27 }
  0x6e   :  { %2036 = vmatpush3.bf16.msra.mxu0 %v2359_v27  ;;  %1851 = vmatprep.subr.mxu1 %v2227_v0 }
  0x6f   :  { %1840 = vmatprep.subr.mxu0 %v2227_v0 }
 0x10f   :  { %v281_v28 = vpop.f32.mrb[0].mxu1 }
 0x110   :  { %vm430_vm2 = vcmp.gt.f32.partialorder %v281_v28, 0.0  ;;  %v438_v29 = vmul.f32 0.01, %v281_v28  ;;  %v210_v30 = vpop.f32.mrb[0].mxu0  ;;  %v283_v31 = vpop.f32.mrb[1].mxu1 }
 0x111   :  { %vm428_vm3 = vcmp.gt.f32.partialorder %v210_v30, 0.0  ;;  %v436_v32 = vmul.f32 0.01, %v210_v30  ;;  %vm431_vm4 = vcmp.gt.f32.partialorder %v283_v31, 0.0  ;;  %v439_v33 = vmul.f32 0.01, %v283_v31 }
 0x112   :  { %v212_v34 = vpop.f32.mrb[1].mxu0  ;;  %v446_v37 = vsel %vm430_vm2, %v281_v28, %v438_v29 }
 0x113   :  { %vm429_vm5 = vcmp.gt.f32.partialorder %v212_v34, 0.0  ;;  %v437_v35 = vmul.f32 0.01, %v212_v34  ;;  %v447_v36 = vsel %vm431_vm4, %v283_v31, %v439_v33  ;;  %v444_v38 = vsel %vm428_vm3, %v210_v30, %v436_v32  ;;  %v879_v31 = vld [vmem:[#allocation4 + $0x130] sm:$0xff]  ;;  %v880_v32 = vld [vmem:[#allocation4 + $0x138] sm:$0xff] }
 0x114   :  { %621 = vmatprep.mubr.f32.mxu1 %v447_v36  ;;  %vm1369_vm3 = vcmask 80896  }
 0x115   :  { %v445_v39 = vsel %vm429_vm5, %v212_v34, %v437_v35  ;;  %622 = vmatmul.mubr.f32.vlgmr.msra.gmra.mrb[4].mxu1 %v446_v37  ;;  %vm2142_vm5 = vmpackc.low %vm1369_vm3, %vm1369_vm3 }
 0x116   :  { %548 = vmatprep.mubr.f32.mxu0 %v445_v39  ;;  %1853 = vmatprep.mubr.msk.f32.mxu1 %vm2228_vm6, %v2227_v0 }
 0x117   :  { %549 = vmatmul.mubr.f32.vlgmr.msra.gmra.mrb[4].mxu0 %v444_v38 }
 0x118   :  { %1842 = vmatprep.mubr.msk.f32.mxu0 %vm2228_vm6, %v2227_v0 }
 0x122   :  { %v2367_v40 = vpop.f32.mrb[2].mxu1 }
 0x123   :  { %v2369_v41 = vpop.f32.mrb[3].mxu1  ;;  %vm434_vm11 = vcmp.gt.f32.partialorder %v2367_v40, 0.0 }
 0x124   :  { %v352_v42 = vpop.f32.mrb[2].mxu0  ;;  %v443_v33 = vmul.f32 0.01, %v2369_v41  ;;  %vm435_vm10 = vcmp.gt.f32.partialorder %v2369_v41, 0.0 }
 0x125   :  { %v354_v43 = vpop.f32.mrb[3].mxu0  ;;  %v440_v2 = vmul.f32 0.01, %v352_v42  ;;  %vm432_vm9 = vcmp.gt.f32.partialorder %v352_v42, 0.0 }
 0x126   :  { %v441_v58 = vmul.f32 0.01, %v354_v43  ;;  %vm433_vm8 = vcmp.gt.f32.partialorder %v354_v43, 0.0 }
 0x127   :  { %v448_v3 = vsel %vm432_vm9, %v352_v42, %v440_v2  ;;  %v1046_v42 = vld [vmem:[#allocation4 + $0x158] sm:$0xff] }
 0x128   :  { %v449_v61 = vsel %vm433_vm8, %v354_v43, %v441_v58  ;;  %v1169_v43 = vld [vmem:[#allocation4 + $0x178] sm:$0xff]  ;;  %vm2231_vm8 = vmmov 1  }
 0x1e8   :  { %v1725_v44 = vpop.f32.mrb[4].mxu1 }
 0x1e9   :  { %v1726_v45 = vpop.f32.mrb[5].mxu1 }
 0x1ea   :  { %v1690_v46 = vpop.f32.mrb[4].mxu0  ;;  %v1727_v47 = vadd.f32 %v1726_v45, %v1725_v44  ;;  %v1170_v44 = vld [vmem:[#allocation4 + $0x180] sm:$0xff] }
 0x1eb   :  { %v1691_v52 = vpop.f32.mrb[5].mxu0  ;;  %v2134_v45 = vpack.c.bf16 %v1170_v44, %v1169_v43  ;;  %v1451_v43 = vld [vmem:[#allocation4 + $0x1c8] sm:$0x1] }
 0x1ec   :  { %v1692_v53 = vadd.f32 %v1691_v52, %v1690_v46  ;;  %1841 = vmatpush3.msra.mxu0 %v1727_v47  ;;  %v2230_v46 = vmov 0.0|0.0   ;;  %v1171_v47 = vld [vmem:[#allocation4 + $0x188] sm:$0x1f] }
 0x1ed   :  { %1843 = vmatmul.mubr.msk.f32.vlgmr.msra.gmra.mrb[6].mxu0 %vm630_vm7, %v627_v48  ;;  %2070 = vmatprep.subr.bf16.mxu0 %v2295_v49 }
 0x1ee   :  { %1852 = vmatpush3.msra.mxu1 %v1692_v53  ;;  %2072 = vmatpush3.bf16.msra.mxu0 %v2297_v50 }
 0x1ef   :  { %1854 = vmatmul.mubr.msk.f32.vlgmr.msra.gmra.mrb[6].mxu1 %vm630_vm7, %v554_v54  ;;  %2074 = vmatprep.subr.bf16.mxu0 %v2300_v51 }
 0x1f0   :  { %1845 = vmatprep.mubr.msk.f32.mxu0 %vm2228_vm6, %v2227_v0  ;;  %1856 = vmatprep.mubr.msk.f32.mxu1 %vm2228_vm6, %v2227_v0 }
 0x1f1   :  { %1846 = vmatmul.mubr.msk.f32.gmra.mrb[8].mxu0 %vm630_vm7, %v628_v55  ;;  %1862 = vmatprep.subr.mxu1 %v2227_v0 }
 0x1f2   :  { %2076 = vmatpush3.bf16.msra.mxu0 %v2310_v56  ;;  %1848 = vmatprep.mubr.msk.f32.mxu0 %vm2228_vm6, %v2227_v0 }
 0x1f3   :  { %2078 = vmatprep.subr.bf16.mxu0 %v2314_v57  ;;  %1857 = vmatmul.mubr.msk.f32.gmra.mrb[8].mxu1 %vm630_vm7, %v555_v59 }
 0x1f4   :  { %1859 = vmatprep.mubr.msk.f32.mxu1 %vm2228_vm6, %v2227_v0 }
 0x1f5   :  { %1849 = vmatmul.mubr.msk.f32.gmra.mrb[10].mxu0 %vm630_vm7, %v629_v60 }
 0x1f6   :  { %2080 = vmatpush3.bf16.msra.mxu0 %v2318_v62  ;;  %873 = vmatprep.mubr.f32.mxu0 %v449_v61 }
 0x1f7   :  { %2082 = vmatprep.subr.bf16.mxu0 %v2322_v63  ;;  %1860 = vmatmul.mubr.msk.f32.gmra.mrb[10].mxu1 %vm630_vm7, %v556_v1 }
 0x1f8   :  { %1864 = vmatprep.mubr.msk.f32.mxu1 %vm2228_vm6, %v2227_v0 }
 0x1fa   :  { %2084 = vmatpush3.bf16.msra.mxu0 %v2326_v5 }
 0x1fb   :  { %2086 = vmatprep.subr.bf16.mxu0 %v2330_v6 }
 0x1fe   :  { %2088 = vmatpush3.bf16.msra.mxu0 %v2334_v11 }
 0x1ff   :  { %2090 = vmatprep.subr.bf16.mxu0 %v2338_v12 }
 0x202   :  { %2092 = vmatpush3.bf16.msra.mxu0 %v2342_v17 }
 0x203   :  { %2094 = vmatprep.subr.bf16.mxu0 %v2346_v18 }
 0x206   :  { %2096 = vmatpush3.bf16.msra.mxu0 %v2350_v21 }
 0x207   :  { %2098 = vmatprep.subr.bf16.mxu0 %v2357_v24 }
 0x20a   :  { %2100 = vmatpush3.bf16.msra.mxu0 %v2359_v27 }
 0x20b   :  { %1873 = vmatprep.subr.mxu0 %v2227_v0 }
 0x20d   :  { %874 = vmatmul.mubr.f32.vlgmr.msra.gmra.mrb[12].mxu0 %v448_v3 }
 0x20e   :  { %1875 = vmatprep.mubr.msk.f32.mxu0 %vm2228_vm6, %v2227_v0 }
 0x2c0   :  { %v706_v4 = vpop.f32.mrb[6].mxu0 }
 0x2c1   :  { %v1844_v7 = vpop.f32.mrb[7].mxu0 }
 0x2c2   :  { %v795_v8 = vpop.f32.mrb[6].mxu1 }
 0x2c3   :  { %v796_v9 = vadd.f32 %v795_v8, %v706_v4  ;;  %v1855_v10 = vpop.f32.mrb[7].mxu1 }
 0x2c4   :  { %v711_v13 = vpop.f32.mrb[8].mxu0 }
 0x2c5   :  { %v1847_v14 = vpop.f32.mrb[9].mxu0 }
 0x2c6   :  { %v800_v15 = vpop.f32.mrb[8].mxu1 }
 0x2c7   :  { %v801_v16 = vadd.f32 %v800_v15, %v711_v13  ;;  %v1858_v19 = vpop.f32.mrb[9].mxu1 }
 0x2c8   :  { %v716_v20 = vpop.f32.mrb[10].mxu0  ;;  %v1266_v19 = vld [vmem:[#allocation4 + $0x190] sm:$0xff] }
 0x2c9   :  { %v1850_v22 = vpop.f32.mrb[11].mxu0 }
 0x2ca   :  { %v805_v23 = vpop.f32.mrb[10].mxu1 }
 0x2cb   :  { %v806_v25 = vadd.f32 %v805_v23, %v716_v20  ;;  %v1861_v26 = vpop.f32.mrb[11].mxu1 }
 0x2e0   :  { %v1768_v28 = vpop.f32.mrb[12].mxu0 }
 0x2e1   :  { %v1769_v29 = vpop.f32.mrb[13].mxu0 }
 0x2e2   :  { %v1770_v30 = vadd.f32 %v1769_v29, %v1768_v28 }
 0x2e4   :  { %1863 = vmatpush3.msra.mxu1 %v1770_v30  ;;  %v1267_v30 = vld [vmem:[#allocation4 + $0x198] sm:$0xf] }
 0x2e5   :  { %1865 = vmatmul.mubr.msk.f32.vlgmr.msra.gmra.mrb[12].mxu1 %vm630_vm7, %v879_v31  ;;  %2102 = vmatprep.subr.bf16.mxu1 %v2295_v49  ;;  %v881_v49 = vld [vmem:[#allocation4 + $0x140] sm:$0xff] }
 0x2e6   :  { %2104 = vmatpush3.bf16.msra.mxu1 %v2297_v50  ;;  %1867 = vmatprep.mubr.msk.f32.mxu1 %vm2228_vm6, %v2227_v0  ;;  %v451_v50 = vsel %vm435_vm10, %v2369_v41, %v443_v33  ;;  %v1045_v41 = vld [vmem:[#allocation4 + $0x150] sm:$0xff]  ;;  %vm1452_vm10 = vcmask 97280  }
 0x2e7   :  { %2106 = vmatprep.subr.bf16.mxu1 %v2300_v51  ;;  %v442_v51 = vmul.f32 0.01, %v2367_v40 }
 0x2e9   :  { %1868 = vmatmul.mubr.msk.f32.gmra.mrb[14].mxu1 %vm630_vm7, %v880_v32 }
 0x2ea   :  { %2108 = vmatpush3.bf16.msra.mxu1 %v2310_v56  ;;  %1870 = vmatprep.mubr.msk.f32.mxu1 %vm2228_vm6, %v2227_v0  ;;  %v450_v56 = vsel %vm434_vm11, %v2367_v40, %v442_v51  ;;  %v1044_v40 = vld [vmem:[#allocation4 + $0x148] sm:$0xff]  ;;  %vm1614_vm11 = vcmask 40960  }
 0x2eb   :  { %2110 = vmatprep.subr.bf16.mxu1 %v2314_v57  ;;  %v1139_v57 = vld [vmem:[#allocation4 + $0x160] sm:$0xff] }
 0x2ed   :  { %1871 = vmatmul.mubr.msk.f32.gmra.mrb[16].mxu1 %vm630_vm7, %v881_v49 }
 0x2ee   :  { %2112 = vmatpush3.bf16.msra.mxu1 %v2318_v62  ;;  %1038 = vmatprep.mubr.f32.mxu1 %v451_v50  ;;  %v2229_v62 = vmov 0  }
 0x2ef   :  { %2114 = vmatprep.subr.bf16.mxu1 %v2322_v63  ;;  %2171 = vset.pattern.permute.xlu0 %v2229_v62  ;;  %v1141_v63 = vld [vmem:[#allocation4 + $0x170] sm:$0xff] }
 0x2f0   :  { %2172 = vset.pattern.permute.xlu1 %v2229_v62  ;;  %1144 = vperm.xlu0 %2171, %v1139_v57  }
 0x2f1   :  { %1154 = vperm.xlu1 %2172, %v1141_v63  }
 0x2f2   :  { %2116 = vmatpush3.bf16.msra.mxu1 %v2326_v5  ;;  %v1140_v5 = vld [vmem:[#allocation4 + $0x168] sm:$0xff] }
 0x2f3   :  { %2118 = vmatprep.subr.bf16.mxu1 %v2330_v6  ;;  %v1268_v6 = vld [vmem:[#allocation4 + $0x1a0] sm:$0xff] }
 0x2f4   :  { %1149 = vperm.xlu0 %2171, %v1140_v5  }
 0x2f5   :  { %1272 = vperm.xlu1 %2172, %v1268_v6   ;;  %v1449_v6 = vld [vmem:[#allocation4 + $0x1b8] sm:$0xff] }
 0x2f6   :  { %2120 = vmatpush3.bf16.msra.mxu1 %v2334_v11  ;;  %v1269_v11 = vld [vmem:[#allocation4 + $0x1a8] sm:$0xf] }
 0x2f7   :  { %2122 = vmatprep.subr.bf16.mxu1 %v2338_v12 }
 0x2f8   :  { %1277 = vperm.xlu0 %2171, %v1269_v11   ;;  %v1450_v11 = vld [vmem:[#allocation4 + $0x1c0] sm:$0xf] }
 0x2fa   :  { %2124 = vmatpush3.bf16.msra.mxu1 %v2342_v17 }
 0x2fb   :  { %2126 = vmatprep.subr.bf16.mxu1 %v2346_v18 }
 0x2fe   :  { %2128 = vmatpush3.bf16.msra.mxu1 %v2350_v21 }
 0x2ff   :  { %2130 = vmatprep.subr.bf16.mxu1 %v2357_v24 }
 0x302   :  { %2132 = vmatpush3.bf16.msra.mxu1 %v2359_v27 }
 0x305   :  { %1039 = vmatmul.mubr.f32.vlgmr.msra.gmra.mrb[18].mxu1 %v450_v56 }
 0x306   :  { %1905 = vmatprep.mubr.msk.f32.mxu1 %vm1280_vm1, %v1266_v19 }
 0x36f   :  { %v1145_v48 = vpop.permute.xlu0 %1144 }
 0x370   :  { %v1155_v10 = vpop.permute.xlu1 %1154 }
 0x373   :  { %v1150_v1 = vpop.permute.xlu0 %1149 }
 0x374   :  { %v1273_v33 = vpop.permute.xlu1 %1272 }
 0x377   :  { %v1278_v31 = vpop.permute.xlu0 %1277 }
 0x3b8   :  { %v957_v12 = vpop.f32.mrb[12].mxu1 }
 0x3b9   :  { %v971_v17 = vadd.f32 %v957_v12, %v796_v9  ;;  %v1866_v18 = vpop.f32.mrb[13].mxu1  ;;  %v1368_v12 = vld [vmem:[#allocation4 + $0x1b0] sm:$0x1] }
 0x3ba   :  { %v1531_v18 = vld [vmem:[#allocation4 + $0x1d0] sm:$0xff] }
 0x3bc   :  { %v962_v21 = vpop.f32.mrb[14].mxu1 }
 0x3bd   :  { %v972_v24 = vadd.f32 %v962_v21, %v801_v16  ;;  %v1869_v27 = vpop.f32.mrb[15].mxu1  ;;  %v1532_v21 = vld [vmem:[#allocation4 + $0x1d8] sm:$0xff] }
 0x3be   :  { %v2149_v27 = vpack.c.bf16 %v1532_v21, %v1531_v18 }
 0x3c0   :  { %v967_v34 = vpop.f32.mrb[16].mxu1 }
 0x3c1   :  { %v973_v35 = vadd.f32 %v967_v34, %v806_v25  ;;  %v1872_v36 = vpop.f32.mrb[17].mxu1  ;;  %v1534_v34 = vld [vmem:[#allocation4 + $0x1e8] sm:$0xff] }
 0x3c2   :  { %v1535_v36 = vld [vmem:[#allocation4 + $0x1f0] sm:$0xff] }
 0x3d8   :  { %v1807_v37 = vpop.f32.mrb[18].mxu1 }
 0x3d9   :  { %v1808_v38 = vpop.f32.mrb[19].mxu1 }
 0x3da   :  { %v1809_v39 = vadd.f32 %v1808_v38, %v1807_v37  ;;  %v1536_v37 = vld [vmem:[#allocation4 + $0x1f8] sm:$0xff] }
 0x3db   :  { %v2155_v38 = vpack.c.bf16 %v1536_v37, %v1535_v36 }
 0x3dc   :  { %1874 = vmatpush3.msra.mxu0 %v1809_v39 }
 0x3dd   :  { %1876 = vmatmul.mubr.msk.f32.vlgmr.msra.gmra.mrb[14].mxu0 %vm630_vm7, %v1044_v40  ;;  %2133 = vmatprep.subr.bf16.mxu0 %v2230_v46  ;;  %v1537_v40 = vld [vmem:[#allocation4 + $0x200] sm:$0xff] }
 0x3de   :  { %1878 = vmatprep.mubr.msk.f32.mxu0 %vm2228_vm6, %v2227_v0  ;;  %2135 = vmatpush3.bf16.msra.mxu0 %v2134_v45 }
 0x3df   :  { %1888 = vmatprep.subr.mxu0 %v2227_v0 }
 0x3e1   :  { %1879 = vmatmul.mubr.msk.f32.gmra.mrb[16].mxu0 %vm630_vm7, %v1045_v41  ;;  %v1538_v41 = vld [vmem:[#allocation4 + $0x208] sm:$0xff] }
 0x3e2   :  { %1881 = vmatprep.mubr.msk.f32.mxu0 %vm2228_vm6, %v2227_v0  ;;  %1889 = vmatpush3.msk.msra.mxu0 %vm1182_vm12, %v1171_v47 }
 0x3e3   :  { %2140 = vmatprep.subr.bf16.mxu0 %v2230_v46 }
 0x3e5   :  { %1882 = vmatmul.mubr.msk.f32.gmra.mrb[18].mxu0 %vm630_vm7, %v1046_v42  ;;  %vm1456_vm7 = vcmask 1043456   ;;  %v2158_v42 = vpack.c.bf16 %v1538_v41, %v1537_v40 }
 0x3e6   :  { %1890 = vmatprep.mubr.msk.f32.mxu0 %vm2228_vm6, %v2227_v0  ;;  %vm2146_vm9 = vmpackc.low %vm1456_vm7, %vm2231_vm8 }
 0x4b0   :  { %v1122_v52 = vpop.f32.mrb[14].mxu0 }
 0x4b1   :  { %v1136_v53 = vadd.f32 %v1122_v52, %v971_v17  ;;  %v1877_v54 = vpop.f32.mrb[15].mxu0  ;;  %v2145_v17 = vpack.c.bf16 %v1450_v11, %v1449_v6  ;;  %v1539_v52 = vld [vmem:[#allocation4 + $0x210] sm:$0x1] }
 0x4b3   :  { %v1157_v55 = vadd.f32 %v1145_v48, %v1136_v53 }
 0x4b4   :  { %v1127_v58 = vpop.f32.mrb[16].mxu0 }
 0x4b5   :  { %vm1160_vm13 = vcmp.gt.f32.partialorder %v1157_v55, 0.0  ;;  %v1163_v59 = vmul.f32 0.01, %v1157_v55  ;;  %v1137_v60 = vadd.f32 %v1127_v58, %v972_v24  ;;  %v1880_v61 = vpop.f32.mrb[17].mxu0  ;;  %v1533_v24 = vld [vmem:[#allocation4 + $0x1e0] sm:$0xff] }
 0x4b7   :  { %v1166_v2 = vsel %vm1160_vm13, %v1157_v55, %v1163_v59  ;;  %v1158_v3 = vadd.f32 %v1150_v1, %v1137_v60 }
 0x4b8   :  { %v1132_v4 = vpop.f32.mrb[18].mxu0  ;;  %1891 = vmatmul.mubr.msk.f32.vlgmr.msra.gmra.mrb[20].mxu0 %vm1172_vm14, %v1166_v2 }
 0x4b9   :  { %v1164_v7 = vmul.f32 0.01, %v1158_v3  ;;  %v1138_v8 = vadd.f32 %v1132_v4, %v973_v35  ;;  %1893 = vmatprep.mubr.msk.f32.mxu0 %vm2228_vm6, %v2227_v0  ;;  %vm1161_vm15 = vcmp.gt.f32.partialorder %v1158_v3, 0.0  ;;  %v1883_v9 = vpop.f32.mrb[19].mxu0  ;;  %v2152_v35 = vpack.c.bf16 %v1534_v34, %v1533_v24 }
 0x4bb   :  { %v1159_v13 = vadd.f32 %v1155_v10, %v1138_v8  ;;  %v1167_v14 = vsel %vm1161_vm15, %v1158_v3, %v1164_v7 }
 0x4bc   :  { %1894 = vmatmul.mubr.msk.f32.gmra.mrb[22].mxu0 %vm1172_vm14, %v1167_v14 }
 0x4bd   :  { %vm1162_vm0 = vcmp.gt.f32.partialorder %v1159_v13, 0.0  ;;  %v1165_v15 = vmul.f32 0.01, %v1159_v13  ;;  %1896 = vmatprep.mubr.msk.f32.mxu0 %vm2228_vm6, %v2227_v0 }
 0x4bf   :  { %v1168_v16 = vsel %vm1162_vm0, %v1159_v13, %v1165_v15 }
 0x4c0   :  { %1897 = vmatmul.mubr.msk.f32.gmra.mrb[24].mxu0 %vm1172_vm14, %v1168_v16 }
 0x4c1   :  { %1912 = vmatprep.mubr.msk.f32.mxu0 %vm2228_vm6, %v2227_v0 }
 0x58b   :  { %v1252_v20 = vpop.f32.mrb[20].mxu0 }
 0x58c   :  { %v1892_v22 = vpop.f32.mrb[21].mxu0 }
 0x58f   :  { %v1257_v23 = vpop.f32.mrb[22].mxu0 }
 0x590   :  { %v2136_v25 = vpack.c.bf16 %v1257_v23, %v1252_v20  ;;  %v1895_v26 = vpop.f32.mrb[23].mxu0 }
 0x592   :  { %2137 = vmatprep.subr.bf16.mxu1 %v2136_v25 }
 0x593   :  { %v1262_v28 = vpop.f32.mrb[24].mxu0  ;;  %2139 = vmatpush3.bf16.msra.mxu1 %v2136_v25 }
 0x594   :  { %v1898_v29 = vpop.f32.mrb[25].mxu0  ;;  %1903 = vmatprep.subr.mxu1 %v1262_v28 }
 0x597   :  { %1904 = vmatpush3.msra.mxu1 %v1262_v28 }
 0x598   :  { %1906 = vmatmul.mubr.msk.f32.vlgmr.msra.gmra.mrb[20].mxu1 %vm1280_vm1, %v1267_v30  ;;  %2148 = vmatprep.subr.bf16.mxu1 %v2230_v46 }
 0x599   :  { %1938 = vmatprep.mubr.msk.f32.mxu1 %vm2228_vm6, %v2227_v0  ;;  %2150 = vmatpush3.bf16.msra.mxu1 %v2149_v27 }
 0x59a   :  { %2151 = vmatprep.subr.bf16.mxu1 %v2230_v46 }
 0x59d   :  { %2153 = vmatpush3.bf16.msra.mxu1 %v2152_v35 }
 0x59e   :  { %2154 = vmatprep.subr.bf16.mxu1 %v2230_v46 }
 0x5a1   :  { %2156 = vmatpush3.bf16.msra.mxu1 %v2155_v38 }
 0x5a2   :  { %2157 = vmatprep.subr.bf16.mxu1 %v2230_v46 }
 0x5a5   :  { %2159 = vmatpush3.bf16.msra.mxu1 %v2158_v42 }
 0x66b   :  { %v1907_v32 = vpop.f32.mrb[20].mxu1 }
 0x66c   :  { %v1359_v49 = vadd.f32 %v1907_v32, %v1278_v31  ;;  %v1353_v50 = vpop.f32.mrb[21].mxu1 }
 0x66d   :  { %v1354_v51 = vadd.f32 %v1353_v50, %v1273_v33 }
 0x66e   :  { %vm1363_vm2 = vcmp.gt.f32.partialorder %v1359_v49, 0.0  ;;  %v1365_v56 = vmul.f32 0.01, %v1359_v49 }
 0x66f   :  { %vm1362_vm4 = vcmp.gt.f32.partialorder %v1354_v51, 0.0  ;;  %v1364_v57 = vmul.f32 0.01, %v1354_v51 }
 0x670   :  { %v1367_v62 = vsel %vm1363_vm2, %v1359_v49, %v1365_v56 }
 0x671   :  { %v1366_v63 = vsel %vm1362_vm4, %v1354_v51, %v1364_v57 }
 0x672   :  { %v2141_v5 = vpack.c.bf16 %v1367_v62, %v1366_v63 }
 0x674   :  { %2143 = vmatpush3.bf16.xpose.msk.msra.mxu0 %vm2142_vm5, %v2141_v5 }
 0x675   :  { %2144 = vmatprep.subr.bf16.mxu0 %v2230_v46 }
 0x67b   :  { %1913 = vmatmul.mubr.msk.f32.vlgmr.msra.gmra.mrb[26].mxu0 %vm1369_vm3, %v1368_v12 }
 0x67c   :  { %2147 = vmatpush3.bf16.msk.msra.mxu0 %vm2146_vm9, %v2145_v17  ;;  %1919 = vmatprep.mubr.msk.f32.mxu0 %vm2228_vm6, %v2227_v0  ;;  %vm1540_vm6 = vcmask 523264  }
 0x74e   :  { %v1445_v0 = vpop.f32.mrb[26].mxu0 }
 0x74f   :  { %v1914_v39 = vpop.f32.mrb[27].mxu0  ;;  %1920 = vmatmul.mubr.msk.f32.vlgmr.msra.gmra.mrb[28].mxu0 %vm1452_vm10, %v1445_v0 }
 0x822   :  { %v1526_v44 = vpop.f32.mrb[28].mxu0 }
 0x823   :  { %v1527_v45 = vadd.f32 %v1526_v44, %v1451_v43  ;;  %v1921_v47 = vpop.f32.mrb[29].mxu0 }
 0x825   :  { %v1530_v48 = vmax.f32 %v1527_v45, 0.0 }
 0x827   :  { %1939 = vmatmul.mubr.msk.f32.vlgmr.msra.gmra.mrb[22].mxu1 %vm1540_vm6, %v1530_v48 }
 0x8fa   :  { %v1610_v53 = vpop.f32.mrb[22].mxu1 }
 0x8fb   :  { %v1611_v54 = vadd.f32 %v1610_v53, %v1539_v52  ;;  %v1940_v46 = vpop.f32.mrb[23].mxu1 }
 0x8fd   :  { %1615 = vst.msk [vmem:[%s2479_s3] sm:$0x1] %vm1614_vm11, %v1611_v54 }
 0x8fe   :  { %1620 = vsyncpa [#allocation3], 1 }
 0x8ff   :  { %1621 = vsyncpa [#allocation5], 1 }

</bundles_post_ra>
